<compile_context>
chip_gen: v7x
topology: tpu7x:2x2x1
jax: 0.10.0
libtpu: 0.0.40
codegen_flags: <defaults>
</compile_context>

<pallas_src>
import functools
from typing import NamedTuple

import jax
import jax.numpy as jnp
from jax.experimental import pallas as pl
from jax.experimental.pallas import tpu as pltpu


def _round_up(x, m):
    return ((x + m - 1) // m) * m


class PackedActorParams(NamedTuple):
    w1: jax.Array          # (in_dim_p, fc1)  compute dtype (bf16)
    b1: jax.Array          # (1, fc1)         f32
    w2: jax.Array          # (fc1, fc2)       compute dtype
    b2: jax.Array          # (1, fc2)         f32
    wh: jax.Array          # (fc2, n_pad)     compute dtype, cols = [Wmu | Wsig | 0]
    bh: jax.Array          # (1, n_pad)       f32,           cols = [bmu | bsig | 0]
    sigma_mask: jax.Array  # (1, n_pad)       f32, 1.0 on the sigma columns


def pack_actor_params(params, *, compute_dtype=jnp.bfloat16):
    """One-time packing of (w1,b1,w2,b2,wmu,bmu,wsig,bsig) into the padded,
    lane-dense bf16 layout the kernel consumes.  Hoisted out of the per-call
    path so repeated inference only pays for the state pad/cast."""
    w1, b1, w2, b2, wmu, bmu, wsig, bsig = params
    in_dim, fc1 = w1.shape
    fc2 = w2.shape[1]
    n_actions = wmu.shape[1]

    in_dim_p = _round_up(in_dim, 128)       # lane-dense K for the first matmul
    n_pad = _round_up(2 * n_actions, 128)   # lane-dense fused head / output

    w1p = jnp.zeros((in_dim_p, fc1), jnp.float32).at[:in_dim, :].set(w1)

    wh = jnp.zeros((fc2, n_pad), jnp.float32)
    wh = wh.at[:, :n_actions].set(wmu).at[:, n_actions:2 * n_actions].set(wsig)
    bh = jnp.zeros((n_pad,), jnp.float32)
    bh = bh.at[:n_actions].set(bmu).at[n_actions:2 * n_actions].set(bsig)
    mask = jnp.zeros((n_pad,), jnp.float32).at[n_actions:2 * n_actions].set(1.0)

    packed = PackedActorParams(
        w1=w1p.astype(compute_dtype),
        b1=b1.reshape(1, fc1).astype(jnp.float32),
        w2=w2.astype(compute_dtype),
        b2=b2.reshape(1, fc2).astype(jnp.float32),
        wh=wh.astype(compute_dtype),
        bh=bh.reshape(1, n_pad).astype(jnp.float32),
        sigma_mask=mask.reshape(1, n_pad),
    )
    meta = dict(in_dim=in_dim, fc1=fc1, fc2=fc2, n_actions=n_actions,
                in_dim_p=in_dim_p, n_pad=n_pad)
    return packed, meta


def actor_forward_kernel(
    x_ref,      # (bm, in_dim_p)   compute dtype (bf16)
    w1_ref,     # (in_dim_p, fc1)  compute dtype
    b1_ref,     # (1, fc1)         f32
    w2_ref,     # (fc1, fc2)       compute dtype
    b2_ref,     # (1, fc2)         f32
    wh_ref,     # (fc2, n_pad)     compute dtype, cols = [Wmu | Wsig | 0]
    bh_ref,     # (1, n_pad)       f32
    mask_ref,   # (1, n_pad)       f32, 1.0 on the sigma columns
    out_ref,    # (bm, n_pad)      bf16 fused output: [mu | clamped sigma | pad]
    *,
    reparam_noise: float,
):
    # fc1: bf16 operands, f32 MXU accumulation; bias/ReLU kept in f32 (v5e VPU).
    h1 = jnp.dot(x_ref[...], w1_ref[...], preferred_element_type=jnp.float32)
    h1 = jnp.maximum(h1 + b1_ref[...], 0.0)

    # fc2
    h2 = jnp.dot(h1.astype(w2_ref.dtype), w2_ref[...],
                 preferred_element_type=jnp.float32)
    h2 = jnp.maximum(h2 + b2_ref[...], 0.0)

    # fused mu|sigma head, lane-dense N (one matmul, one unmasked store)
    y = jnp.dot(h2.astype(wh_ref.dtype), wh_ref[...],
                preferred_element_type=jnp.float32)
    y = y + bh_ref[...]

    # Clamp only the sigma columns via the precomputed resident mask (no per-step
    # iota/compares):  out = y on mu cols, clip(y, noise, 1) on sigma cols.
    clipped = jnp.clip(y, reparam_noise, 1.0)
    out_ref[...] = (y + mask_ref[...] * (clipped - y)).astype(out_ref.dtype)


def _choose_bm(B):
    """Batch-tile heuristic: tight tile at small B (no wasted MXU rows or output
    writeback); large tiles (<=1024 rows) with >=2 grid steps at large B so the
    'parallel' batch axis can shard across both v7x TensorCores."""
    b16 = max(16, _round_up(B, 16))        # 16 = bf16 sublane pack
    if b16 <= 256:
        return b16                         # single tight step; latency regime
    return min(1024, _round_up(pl.cdiv(b16, 2), 16))


def actor_forward(state, packed, *, n_actions, reparam_noise=1e-6,
                  bm=None, out_dtype=jnp.bfloat16):
    """ActorNetwork forward. state: (B, input_dim) f32; packed from
    pack_actor_params. Returns (mu, sigma) in f32, each (B, n_actions)."""
    B, in_dim = state.shape
    in_dim_p, fc1 = packed.w1.shape
    fc2, n_pad = packed.wh.shape
    compute_dtype = packed.w1.dtype

    if bm is None:
        bm = _choose_bm(B)
    B_pad = _round_up(B, bm)
    grid = (B_pad // bm,)

    # Only per-call data work: cast + pad the state tile (cheap, input-dependent).
    xp = jnp.pad(state.astype(compute_dtype),
                 ((0, B_pad - B), (0, in_dim_p - in_dim)))

    full = lambda i: (0, 0)  # weights / biases / mask: resident block each step

    kernel = functools.partial(actor_forward_kernel, reparam_noise=reparam_noise)

    itemsize = jnp.dtype(compute_dtype).itemsize
    flops = 2 * B_pad * (in_dim_p * fc1 + fc1 * fc2 + fc2 * n_pad)
    bytes_accessed = (
        (xp.size + packed.w1.size + packed.w2.size + packed.wh.size) * itemsize
        + (packed.b1.size + packed.b2.size + packed.bh.size
           + packed.sigma_mask.size) * 4
        + B_pad * n_pad * jnp.dtype(out_dtype).itemsize
    )
    cost = pl.CostEstimate(flops=flops, transcendentals=0,
                           bytes_accessed=bytes_accessed)

    fused = pl.pallas_call(
        kernel,
        out_shape=jax.ShapeDtypeStruct((B_pad, n_pad), out_dtype),
        grid_spec=pltpu.PrefetchScalarGridSpec(
            num_scalar_prefetch=0,
            grid=grid,
            in_specs=[
                pl.BlockSpec((bm, in_dim_p), lambda i: (i, 0)),   # state tile
                pl.BlockSpec((in_dim_p, fc1), full),              # W1
                pl.BlockSpec((1, fc1), full),                     # b1
                pl.BlockSpec((fc1, fc2), full),                   # W2
                pl.BlockSpec((1, fc2), full),                     # b2
                pl.BlockSpec((fc2, n_pad), full),                 # W_head (mu|sig)
                pl.BlockSpec((1, n_pad), full),                   # b_head
                pl.BlockSpec((1, n_pad), full),                   # sigma mask
            ],
            out_specs=pl.BlockSpec((bm, n_pad), lambda i: (i, 0)),
        ),
        compiler_params=pltpu.CompilerParams(
            dimension_semantics=("parallel",),   # batch axis shards across TCs
        ),
        cost_estimate=cost,
    )(xp, packed.w1, packed.b1, packed.w2, packed.b2,
      packed.wh, packed.bh, packed.sigma_mask)

    # Slice off padded rows / columns (they contain garbage by construction).
    mu = fused[:B, :n_actions].astype(jnp.float32)
    sigma = fused[:B, n_actions:2 * n_actions].astype(jnp.float32)
    return mu, sigma


def init_actor_params(key, input_dim, fc1_dims, fc2_dims, n_actions):
    """Deterministic init mimicking nn.Linear's U(-1/sqrt(fan_in), 1/sqrt(fan_in)).
    Weights stored as (in_features, out_features)."""
    ks = jax.random.split(key, 8)

    def linear(kw, kb, fan_in, fan_out):
        bound = 1.0 / jnp.sqrt(fan_in)
        w = jax.random.uniform(kw, (fan_in, fan_out), jnp.float32, -bound, bound)
        b = jax.random.uniform(kb, (fan_out,), jnp.float32, -bound, bound)
        return w, b

    w1, b1 = linear(ks[0], ks[1], input_dim, fc1_dims)
    w2, b2 = linear(ks[2], ks[3], fc1_dims, fc2_dims)
    wmu, bmu = linear(ks[4], ks[5], fc2_dims, n_actions)
    wsig, bsig = linear(ks[6], ks[7], fc2_dims, n_actions)
    return (w1, b1, w2, b2, wmu, bmu, wsig, bsig)


def actor_forward_ref(state, params, reparam_noise=1e-6):
    """Pure-JAX f32 reference (exact PyTorch-equivalent math)."""
    w1, b1, w2, b2, wmu, bmu, wsig, bsig = params
    h1 = jnp.maximum(state @ w1 + b1, 0.0)
    h2 = jnp.maximum(h1 @ w2 + b2, 0.0)
    mu = h2 @ wmu + bmu
    sigma = jnp.clip(h2 @ wsig + bsig, reparam_noise, 1.0)
    return mu, sigma


def actor_forward_ref_bf16(state, params, reparam_noise=1e-6):
    """Pure-JAX reference mirroring the kernel's bf16-operand / f32-accum math."""
    w1, b1, w2, b2, wmu, bmu, wsig, bsig = params
    bf, f32 = jnp.bfloat16, jnp.float32
    h1 = jnp.maximum(
        jnp.dot(state.astype(bf), w1.astype(bf), preferred_element_type=f32) + b1, 0.0)
    h2 = jnp.maximum(
        jnp.dot(h1.astype(bf), w2.astype(bf), preferred_element_type=f32) + b2, 0.0)
    mu = jnp.dot(h2.astype(bf), wmu.astype(bf), preferred_element_type=f32) + bmu
    sigma = jnp.clip(
        jnp.dot(h2.astype(bf), wsig.astype(bf), preferred_element_type=f32) + bsig,
        reparam_noise, 1.0)
    return mu, sigma


if __name__ == "__main__":
    # Small shapes consistent with the module: input_dims=(32,), fc1=fc2=256, n_actions=2
    batch = 8
    input_dim = 32
    fc1_dims = 256
    fc2_dims = 256
    n_actions = 2

    key = jax.random.PRNGKey(0)
    kparam, kstate = jax.random.split(key)

    params = init_actor_params(kparam, input_dim, fc1_dims, fc2_dims, n_actions)
    state = jax.random.normal(kstate, (batch, input_dim), jnp.float32)

    # one-time packing (hoisted out of the per-call path)
    packed, meta = pack_actor_params(params)

    fwd = jax.jit(functools.partial(actor_forward, n_actions=n_actions))
    mu, sigma = fwd(state, packed)
    jax.block_until_ready((mu, sigma))

    assert mu.shape == (batch, n_actions) and sigma.shape == (batch, n_actions)

    # check vs a reference mirroring the kernel's bf16-in / f32-accum math
    # (bf16 output rounding adds ~0.4% on top)
    mu_b, sig_b = actor_forward_ref_bf16(state, params)
    assert jnp.allclose(mu, mu_b, atol=1e-2, rtol=1e-2)
    assert jnp.allclose(sigma, sig_b, atol=1e-2, rtol=1e-2)

    # loose check vs the exact f32 reference (bf16 operand rounding ~1% level)
    mu_f, sig_f = actor_forward_ref(state, params)
    assert jnp.allclose(mu, mu_f, atol=5e-2, rtol=5e-2)
    assert jnp.allclose(sigma, sig_f, atol=5e-2, rtol=5e-2)

    # clamp range sanity (bf16 output rounds 1e-6 down by <0.2%)
    assert jnp.all(sigma >= 1e-6 * 0.98) and jnp.all(sigma <= 1.0 + 1e-3)

    print("KERNEL_OK")
</pallas_src>

<mosaic_0001>
module attributes {stable_mosaic.version = 11 : i64} {
  func.func @actor_forward_kernel(%arg0: i32, %arg1: memref<16x128xbf16, #tpu.memory_space<vmem>>, %arg2: memref<128x256xbf16, #tpu.memory_space<vmem>>, %arg3: memref<1x256xf32, #tpu.memory_space<vmem>>, %arg4: memref<256x256xbf16, #tpu.memory_space<vmem>>, %arg5: memref<1x256xf32, #tpu.memory_space<vmem>>, %arg6: memref<256x128xbf16, #tpu.memory_space<vmem>>, %arg7: memref<1x128xf32, #tpu.memory_space<vmem>>, %arg8: memref<1x128xf32, #tpu.memory_space<vmem>>, %arg9: memref<16x128xbf16, #tpu.memory_space<vmem>>) attributes {dimension_semantics = [#tpu.dimension_semantics<parallel>], iteration_bounds = array<i64: 1>, scalar_prefetch = 0 : i64, scratch_operands = 0 : i64, tpu.core_type = #tpu.core_type<tc>, window_params = [{transform_indices = @transform_0, window_bounds = array<i64: 16, 128>}, {pipeline_mode = #tpu.pipeline_mode<synchronous>, transform_indices = @transform_1, window_bounds = array<i64: 128, 256>}, {pipeline_mode = #tpu.pipeline_mode<synchronous>, transform_indices = @transform_2, window_bounds = array<i64: 1, 256>}, {pipeline_mode = #tpu.pipeline_mode<synchronous>, transform_indices = @transform_3, window_bounds = array<i64: 256, 256>}, {pipeline_mode = #tpu.pipeline_mode<synchronous>, transform_indices = @transform_4, window_bounds = array<i64: 1, 256>}, {pipeline_mode = #tpu.pipeline_mode<synchronous>, transform_indices = @transform_5, window_bounds = array<i64: 256, 128>}, {pipeline_mode = #tpu.pipeline_mode<synchronous>, transform_indices = @transform_6, window_bounds = array<i64: 1, 128>}, {pipeline_mode = #tpu.pipeline_mode<synchronous>, transform_indices = @transform_7, window_bounds = array<i64: 1, 128>}, {transform_indices = @transform_8, window_bounds = array<i64: 16, 128>}]} {
    %c0 = arith.constant 0 : index
    %c0_0 = arith.constant 0 : index
    %0 = vector.load %arg1[%c0, %c0_0] : memref<16x128xbf16, #tpu.memory_space<vmem>>, vector<16x128xbf16>
    %c0_1 = arith.constant 0 : index
    %c0_2 = arith.constant 0 : index
    %1 = vector.load %arg2[%c0_1, %c0_2] : memref<128x256xbf16, #tpu.memory_space<vmem>>, vector<128x256xbf16>
    %cst = arith.constant dense<0.000000e+00> : vector<16x256xf32>
    %2 = tpu.matmul %0, %1, %cst {dimension_numbers = #tpu.dot_dimension_numbers<[1], [0], [0], [1], [0, 0, 1, 1], [], []>} : vector<16x128xbf16>, vector<128x256xbf16>, vector<16x256xf32> -> vector<16x256xf32>
    %c0_3 = arith.constant 0 : index
    %c0_4 = arith.constant 0 : index
    %3 = vector.load %arg3[%c0_3, %c0_4] : memref<1x256xf32, #tpu.memory_space<vmem>>, vector<1x256xf32>
    %4 = vector.broadcast %3 : vector<1x256xf32> to vector<16x256xf32>
    %5 = arith.addf %2, %4 : vector<16x256xf32>
    %cst_5 = arith.constant 0.000000e+00 : f32
    %6 = vector.broadcast %cst_5 : f32 to vector<16x256xf32>
    %7 = arith.maximumf %5, %6 : vector<16x256xf32>
    %8 = arith.truncf %7 : vector<16x256xf32> to vector<16x256xbf16>
    %c0_6 = arith.constant 0 : index
    %c0_7 = arith.constant 0 : index
    %9 = vector.load %arg4[%c0_6, %c0_7] : memref<256x256xbf16, #tpu.memory_space<vmem>>, vector<256x256xbf16>
    %cst_8 = arith.constant dense<0.000000e+00> : vector<16x256xf32>
    %10 = tpu.matmul %8, %9, %cst_8 {dimension_numbers = #tpu.dot_dimension_numbers<[1], [0], [0], [1], [0, 0, 1, 1], [], []>} : vector<16x256xbf16>, vector<256x256xbf16>, vector<16x256xf32> -> vector<16x256xf32>
    %c0_9 = arith.constant 0 : index
    %c0_10 = arith.constant 0 : index
    %11 = vector.load %arg5[%c0_9, %c0_10] : memref<1x256xf32, #tpu.memory_space<vmem>>, vector<1x256xf32>
    %12 = vector.broadcast %11 : vector<1x256xf32> to vector<16x256xf32>
    %13 = arith.addf %10, %12 : vector<16x256xf32>
    %cst_11 = arith.constant 0.000000e+00 : f32
    %14 = vector.broadcast %cst_11 : f32 to vector<16x256xf32>
    %15 = arith.maximumf %13, %14 : vector<16x256xf32>
    %16 = arith.truncf %15 : vector<16x256xf32> to vector<16x256xbf16>
    %c0_12 = arith.constant 0 : index
    %c0_13 = arith.constant 0 : index
    %17 = vector.load %arg6[%c0_12, %c0_13] : memref<256x128xbf16, #tpu.memory_space<vmem>>, vector<256x128xbf16>
    %cst_14 = arith.constant dense<0.000000e+00> : vector<16x128xf32>
    %18 = tpu.matmul %16, %17, %cst_14 {dimension_numbers = #tpu.dot_dimension_numbers<[1], [0], [0], [1], [0, 0, 1, 1], [], []>} : vector<16x256xbf16>, vector<256x128xbf16>, vector<16x128xf32> -> vector<16x128xf32>
    %c0_15 = arith.constant 0 : index
    %c0_16 = arith.constant 0 : index
    %19 = vector.load %arg7[%c0_15, %c0_16] : memref<1x128xf32, #tpu.memory_space<vmem>>, vector<1x128xf32>
    %20 = vector.broadcast %19 : vector<1x128xf32> to vector<16x128xf32>
    %21 = arith.addf %18, %20 : vector<16x128xf32>
    %cst_17 = arith.constant 9.99999997E-7 : f32
    %cst_18 = arith.constant 1.000000e+00 : f32
    %22 = vector.broadcast %cst_17 : f32 to vector<16x128xf32>
    %23 = arith.maximumf %22, %21 : vector<16x128xf32>
    %24 = vector.broadcast %cst_18 : f32 to vector<16x128xf32>
    %25 = arith.minimumf %24, %23 : vector<16x128xf32>
    %c0_19 = arith.constant 0 : index
    %c0_20 = arith.constant 0 : index
    %26 = vector.load %arg8[%c0_19, %c0_20] : memref<1x128xf32, #tpu.memory_space<vmem>>, vector<1x128xf32>
    %27 = arith.subf %25, %21 : vector<16x128xf32>
    %28 = vector.broadcast %26 : vector<1x128xf32> to vector<16x128xf32>
    %29 = arith.mulf %28, %27 : vector<16x128xf32>
    %30 = arith.addf %21, %29 : vector<16x128xf32>
    %31 = arith.truncf %30 : vector<16x128xf32> to vector<16x128xbf16>
    %c0_21 = arith.constant 0 : index
    %c0_22 = arith.constant 0 : index
    %32 = vector.load %arg9[%c0_21, %c0_22] : memref<16x128xbf16, #tpu.memory_space<vmem>>, vector<16x128xbf16>
    tpu.vector_store %arg9[%c0_21, %c0_22], %31 {strides = array<i32>} : memref<16x128xbf16, #tpu.memory_space<vmem>>, vector<16x128xbf16>,
    return
  }
  func.func @transform_0(%arg0: i32) -> (i32, i32) {
    %c0_i32 = arith.constant 0 : i32
    %c0_i32_0 = arith.constant 0 : i32
    return %arg0, %c0_i32 : i32, i32
  }
  func.func @transform_1(%arg0: i32) -> (i32, i32) {
    %c0_i32 = arith.constant 0 : i32
    %c0_i32_0 = arith.constant 0 : i32
    %c0_i32_1 = arith.constant 0 : i32
    return %c0_i32, %c0_i32_0 : i32, i32
  }
  func.func @transform_2(%arg0: i32) -> (i32, i32) {
    %c0_i32 = arith.constant 0 : i32
    %c0_i32_0 = arith.constant 0 : i32
    %c0_i32_1 = arith.constant 0 : i32
    return %c0_i32, %c0_i32_0 : i32, i32
  }
  func.func @transform_3(%arg0: i32) -> (i32, i32) {
    %c0_i32 = arith.constant 0 : i32
    %c0_i32_0 = arith.constant 0 : i32
    %c0_i32_1 = arith.constant 0 : i32
    return %c0_i32, %c0_i32_0 : i32, i32
  }
  func.func @transform_4(%arg0: i32) -> (i32, i32) {
    %c0_i32 = arith.constant 0 : i32
    %c0_i32_0 = arith.constant 0 : i32
    %c0_i32_1 = arith.constant 0 : i32
    return %c0_i32, %c0_i32_0 : i32, i32
  }
  func.func @transform_5(%arg0: i32) -> (i32, i32) {
    %c0_i32 = arith.constant 0 : i32
    %c0_i32_0 = arith.constant 0 : i32
    %c0_i32_1 = arith.constant 0 : i32
    return %c0_i32, %c0_i32_0 : i32, i32
  }
  func.func @transform_6(%arg0: i32) -> (i32, i32) {
    %c0_i32 = arith.constant 0 : i32
    %c0_i32_0 = arith.constant 0 : i32
    %c0_i32_1 = arith.constant 0 : i32
    return %c0_i32, %c0_i32_0 : i32, i32
  }
  func.func @transform_7(%arg0: i32) -> (i32, i32) {
    %c0_i32 = arith.constant 0 : i32
    %c0_i32_0 = arith.constant 0 : i32
    %c0_i32_1 = arith.constant 0 : i32
    return %c0_i32, %c0_i32_0 : i32, i32
  }
  func.func @transform_8(%arg0: i32) -> (i32, i32) {
    %c0_i32 = arith.constant 0 : i32
    %c0_i32_0 = arith.constant 0 : i32
    return %arg0, %c0_i32 : i32, i32
  }
}

</mosaic_0001>

<bundles_post_ra>
// kernel: actor_forward.1
= control target key start
LH: loop header
LB: loop body
LE: loop exit
PB: predicated region body
PF: predicated region fallthrough
CT: control target
= control target key end

     0   :  { %13 = vsyncpa [#allocation3], 0  ;;  %s1077_s0 = inlined_call_operand.vmem [shape: bf16[16,128], index: 0, kind: input, shape index: {}]   ;;  %s1078_s1 = inlined_call_operand.hbm [shape: bf16[128,256], index: 1, kind: input, shape index: {}]   ;;  %s1079_s2 = inlined_call_operand.vmem [shape: f32[1,256], index: 2, kind: input, shape index: {}]   ;;  %s1080_s3 = inlined_call_operand.hbm [shape: bf16[256,256], index: 3, kind: input, shape index: {}]   ;;  %s1081_s4 = inlined_call_operand.vmem [shape: f32[1,256], index: 4, kind: input, shape index: {}]   ;;  %s1082_s5 = inlined_call_operand.hbm [shape: bf16[256,128], index: 5, kind: input, shape index: {}]   ;;  %s1083_s6 = inlined_call_operand.vmem [shape: f32[1,128], index: 6, kind: input, shape index: {}]   ;;  %s1084_s7 = inlined_call_operand.vmem [shape: f32[1,128], index: 7, kind: input, shape index: {}]   ;;  %s1085_s8 = inlined_call_operand.vmem [shape: bf16[16,128], index: 8, kind: output, shape index: {}]  }
   0x1   :  { %14 = vsyncpa [#allocation5], 0  ;;  %s963_s27 = smov [#allocation4]   ;;  %s964_s29 = smov [#allocation2]  }
   0x2   :  { %s36_s28 = sshll.u32 %s963_s27, 4  ;;  %s22_s30 = sshll.u32 %s964_s29, 4  ;;  %s37_s28 = int_to_ptr.vmem [resolvable:$true] %s36_s28  ;;  %s1016_s30 = int_to_ptr.vmem [resolvable:$true] %s22_s30 }
   0x3   :  { %s893_s11 = scalar_lea.hbm %s1080_s3, 4096 }
   0x4   :  { %p894_p0 = scmp.ne.s32.totalorder %s1080_s3, %s893_s11  ;;  %p897_p1 = scmp.lt.u32.totalorder %s893_s11, %s1080_s3 }
   0x6   :  { %p899_p2 = pnand %p897_p1, %p894_p0 }
   0x8   :  { %902 = shalt.err (!%p899_p2)
}
   0x9   :  { %s903_s16 = scalar_lea.vmem %s37_s28, 4096  ;;  %p908_p4 = scmp.lt.s32.totalorder %s37_s28, %s37_s28 }
   0xa   :  { %p904_p3 = scmp.ne.s32.totalorder %s37_s28, %s903_s16  ;;  %p909_p5 = scmp.lt.s32.totalorder %s903_s16, %s903_s16 }
   0xc   :  { %p910_p6 = por %p909_p5, %p908_p4 }
   0xe   :  { %p911_p7 = pnand %p910_p6, %p904_p3 }
  0x10   :  { %914 = shalt.err (!%p911_p7)
}
  0x11   :  { %s965_s17 = smov 128   ;;  %s966_s18 = smov 8  }
  0x12   :  { %42 = dma.hbm_to_vmem [thread:$0]  %s1080_s3, 4096, %s37_s28, [#allocation5], %s965_s17, %s965_s17, %s966_s18  }
  0x13   :  { %s915_s23 = scalar_lea.hbm %s1078_s1, 2048 }
  0x14   :  { %p916_p8 = scmp.ne.s32.totalorder %s1078_s1, %s915_s23  ;;  %p919_p9 = scmp.lt.u32.totalorder %s915_s23, %s1078_s1 }
  0x16   :  { %p921_p10 = pnand %p919_p9, %p916_p8 }
  0x18   :  { %924 = shalt.err (!%p921_p10)
}
  0x19   :  { %s925_s29 = scalar_lea.vmem %s1016_s30, 2048  ;;  %p930_p12 = scmp.lt.s32.totalorder %s1016_s30, %s1016_s30 }
  0x1a   :  { %p926_p11 = scmp.ne.s32.totalorder %s1016_s30, %s925_s29  ;;  %p931_p13 = scmp.lt.s32.totalorder %s925_s29, %s925_s29 }
  0x1c   :  { %p932_p0 = por %p931_p13, %p930_p12 }
  0x1e   :  { %p933_p1 = pnand %p932_p0, %p926_p11 }
  0x20   :  { %936 = shalt.err (!%p933_p1)
}
  0x21   :  { %28 = dma.hbm_to_vmem [thread:$0]  %s1078_s1, 2048, %s1016_s30, [#allocation3], %s965_s17, %s965_s17, %s966_s18  }
  0x22   :  { %s967_s9 = smov [#allocation6]   ;;  %s937_s13 = scalar_lea.hbm %s1082_s5, 2048 }
  0x23   :  { %s50_s10 = sshll.u32 %s967_s9, 4  ;;  %p938_p2 = scmp.ne.s32.totalorder %s1082_s5, %s937_s13  ;;  %s51_s10 = int_to_ptr.vmem [resolvable:$true] %s50_s10 }
  0x24   :  { %p941_p3 = scmp.lt.u32.totalorder %s937_s13, %s1082_s5 }
  0x26   :  { %p943_p4 = pnand %p941_p3, %p938_p2 }
  0x28   :  { %946 = shalt.err (!%p943_p4)
}
  0x29   :  { %s947_s20 = scalar_lea.vmem %s51_s10, 2048  ;;  %p952_p6 = scmp.lt.s32.totalorder %s51_s10, %s51_s10 }
  0x2a   :  { %p948_p5 = scmp.ne.s32.totalorder %s51_s10, %s947_s20  ;;  %p953_p7 = scmp.lt.s32.totalorder %s947_s20, %s947_s20 }
  0x2c   :  { %p954_p8 = por %p953_p7, %p952_p6 }
  0x2e   :  { %p955_p9 = pnand %p954_p8, %p948_p5 }
  0x30   :  { %958 = shalt.err (!%p955_p9)
}
  0x31   :  { %s968_s1 = smov 64   ;;  %s969_s30 = smov 4  }
  0x32   :  { %56 = dma.hbm_to_vmem [thread:$0]  %s1082_s5, 2048, %s51_s10, [#allocation5], %s968_s1, %s968_s1, %s969_s30  }
  0x33   :  { %959 = dma.done.wait [#allocation3], 2048  }
  0x34   :  { %960 = vsyncadd [#allocation3], 4294965248 }
  0x35   :  { %961 = dma.done.wait [#allocation5], 6144  }
  0x36   :  { %962 = vsyncadd [#allocation5], 4294961152  ;;  %v970_v0 = vmov 0   ;;  %v804_v1 = vld [vmem:[#allocation2 + $0x4] ss:$8 sps:$4 sm:$0xff]   ;;  %v881_v54 = vld [vmem:[#allocation6 + $0x50] sm:$0xff]   ;;  %v91_v61 = vlaneseq }
  0x37   :  { %219 = vmatprep.mubr.bf16.mxu0 %v970_v0  ;;  %v806_v2 = vld [vmem:[#allocation2] ss:$8 sps:$4 sm:$0xff]   ;;  %187 = vmatprep.subr.bf16.mxu0 %v804_v1  ;;  %v807_v3 = vld [vmem:[#allocation2 + $0x14] ss:$8 sps:$4 sm:$0xff]   ;;  %v809_v4 = vld [vmem:[#allocation2 + $0x10] ss:$8 sps:$4 sm:$0xff]  }
  0x38   :  { %188 = vmatpush1.bf16.msra.mxu0 %v806_v2  ;;  %v810_v5 = vld [vmem:[#allocation2 + $0x24] ss:$8 sps:$4 sm:$0xff]   ;;  %v812_v6 = vld [vmem:[#allocation2 + $0x20] ss:$8 sps:$4 sm:$0xff]   ;;  %v813_v7 = vld [vmem:[#allocation2 + $0x34] ss:$8 sps:$4 sm:$0xff]  }
  0x39   :  { %189 = vmatprep.subr.bf16.mxu0 %v807_v3  ;;  %v815_v8 = vld [vmem:[#allocation2 + $0x30] ss:$8 sps:$4 sm:$0xff]   ;;  %v816_v9 = vld [vmem:[#allocation2 + $0x44] ss:$8 sps:$4 sm:$0xff]   ;;  %v831_v11 = vld [vmem:[#allocation4] ss:$8 sps:$4 sm:$0xff]  }
  0x3a   :  { %v829_v10 = vld [vmem:[#allocation4 + $0x4] ss:$8 sps:$4 sm:$0xff]   ;;  %v832_v12 = vld [vmem:[#allocation4 + $0x14] ss:$8 sps:$4 sm:$0xff]   ;;  %v818_v13 = vld [vmem:[#allocation2 + $0x40] ss:$8 sps:$4 sm:$0xff]  }
  0x3b   :  { %440 = vmatprep.subr.bf16.mxu1 %v829_v10  ;;  %v834_v14 = vld [vmem:[#allocation4 + $0x10] ss:$8 sps:$4 sm:$0xff]   ;;  %v819_v15 = vld [vmem:[#allocation2 + $0x54] ss:$8 sps:$4 sm:$0xff]   ;;  %v835_v16 = vld [vmem:[#allocation4 + $0x24] ss:$8 sps:$4 sm:$0xff]  }
  0x3c   :  { %190 = vmatpush1.bf16.msra.mxu0 %v809_v4  ;;  %441 = vmatpush1.bf16.msra.mxu1 %v831_v11  ;;  %v821_v17 = vld [vmem:[#allocation2 + $0x50] ss:$8 sps:$4 sm:$0xff]   ;;  %v837_v18 = vld [vmem:[#allocation4 + $0x20] ss:$8 sps:$4 sm:$0xff]   ;;  %v822_v19 = vld [vmem:[#allocation2 + $0x64] ss:$8 sps:$4 sm:$0xff]  }
  0x3d   :  { %191 = vmatprep.subr.bf16.mxu0 %v810_v5  ;;  %442 = vmatprep.subr.bf16.mxu1 %v832_v12  ;;  %v838_v20 = vld [vmem:[#allocation4 + $0x34] ss:$8 sps:$4 sm:$0xff]   ;;  %v824_v21 = vld [vmem:[#allocation2 + $0x60] ss:$8 sps:$4 sm:$0xff]   ;;  %v840_v22 = vld [vmem:[#allocation4 + $0x30] ss:$8 sps:$4 sm:$0xff]  }
  0x3e   :  { %v825_v23 = vld [vmem:[#allocation2 + $0x74] ss:$8 sps:$4 sm:$0xff]   ;;  %v841_v24 = vld [vmem:[#allocation4 + $0x44] ss:$8 sps:$4 sm:$0xff]   ;;  %v827_v25 = vld [vmem:[#allocation2 + $0x70] ss:$8 sps:$4 sm:$0xff]  }
  0x3f   :  { %v843_v26 = vld [vmem:[#allocation4 + $0x40] ss:$8 sps:$4 sm:$0xff]   ;;  %v844_v28 = vld [vmem:[#allocation4 + $0x54] ss:$8 sps:$4 sm:$0xff]   ;;  %v846_v29 = vld [vmem:[#allocation4 + $0x50] ss:$8 sps:$4 sm:$0xff]  }
  0x40   :  { %192 = vmatpush1.bf16.msra.mxu0 %v812_v6  ;;  %443 = vmatpush1.bf16.msra.mxu1 %v834_v14  ;;  %v828_v27 = vld [vmem:[%s1077_s0] sm:$0xff]   ;;  %v850_v32 = vld [vmem:[#allocation4 + $0x74] ss:$8 sps:$4 sm:$0xff]   ;;  %v852_v33 = vld [vmem:[#allocation4 + $0x70] ss:$8 sps:$4 sm:$0xff]   ;;  %v92_v62 = vshrl.u32 %v91_v61, 7 }
  0x41   :  { %193 = vmatprep.subr.bf16.mxu0 %v813_v7  ;;  %444 = vmatprep.subr.bf16.mxu1 %v835_v16  ;;  %v847_v30 = vld [vmem:[#allocation4 + $0x64] ss:$8 sps:$4 sm:$0xff]   ;;  %v849_v31 = vld [vmem:[#allocation4 + $0x60] ss:$8 sps:$4 sm:$0xff]   ;;  %v856_v36 = vld [vmem:[#allocation4 + $0x94] ss:$8 sps:$4 sm:$0xff]  }
  0x42   :  { %v853_v34 = vld [vmem:[#allocation4 + $0x84] ss:$8 sps:$4 sm:$0xff]   ;;  %v855_v35 = vld [vmem:[#allocation4 + $0x80] ss:$8 sps:$4 sm:$0xff]   ;;  %v858_v37 = vld [vmem:[#allocation4 + $0x90] ss:$8 sps:$4 sm:$0xff]  }
  0x43   :  { %v859_v38 = vld [vmem:[#allocation4 + $0xa4] ss:$8 sps:$4 sm:$0xff]   ;;  %v861_v39 = vld [vmem:[#allocation4 + $0xa0] ss:$8 sps:$4 sm:$0xff]   ;;  %v862_v40 = vld [vmem:[#allocation4 + $0xb4] ss:$8 sps:$4 sm:$0xff]  }
  0x44   :  { %194 = vmatpush1.bf16.msra.mxu0 %v815_v8  ;;  %445 = vmatpush1.bf16.msra.mxu1 %v837_v18  ;;  %v864_v41 = vld [vmem:[#allocation4 + $0xb0] ss:$8 sps:$4 sm:$0xff]   ;;  %v865_v42 = vld [vmem:[#allocation4 + $0xc4] ss:$8 sps:$4 sm:$0xff]   ;;  %v867_v43 = vld [vmem:[#allocation4 + $0xc0] ss:$8 sps:$4 sm:$0xff]  }
  0x45   :  { %195 = vmatprep.subr.bf16.mxu0 %v816_v9  ;;  %446 = vmatprep.subr.bf16.mxu1 %v838_v20  ;;  %v868_v44 = vld [vmem:[#allocation4 + $0xd4] ss:$8 sps:$4 sm:$0xff]   ;;  %v870_v45 = vld [vmem:[#allocation4 + $0xd0] ss:$8 sps:$4 sm:$0xff]   ;;  %v871_v46 = vld [vmem:[#allocation4 + $0xe4] ss:$8 sps:$4 sm:$0xff]  }
  0x46   :  { %v873_v47 = vld [vmem:[#allocation4 + $0xe0] ss:$8 sps:$4 sm:$0xff]   ;;  %v874_v48 = vld [vmem:[#allocation4 + $0xf4] ss:$8 sps:$4 sm:$0xff]   ;;  %v876_v49 = vld [vmem:[#allocation4 + $0xf0] ss:$8 sps:$4 sm:$0xff]  }
  0x47   :  { %v877_v50 = vld [vmem:[#allocation6 + $0x40] sm:$0xff]   ;;  %v879_v52 = vld [vmem:[#allocation6 + $0x48] sm:$0xff]   ;;  %v882_v55 = vld [vmem:[#allocation6 + $0x10] sm:$0xff]   ;;  %v93_v63 = vsub.s32 0, %v92_v62  ;;  %v97_v1 = vsub.s32 1, %v92_v62 }
  0x48   :  { %196 = vmatpush1.bf16.msra.mxu0 %v818_v13  ;;  %447 = vmatpush1.bf16.msra.mxu1 %v840_v22  ;;  %v878_v51 = vld [vmem:[#allocation6] sm:$0xff]   ;;  %v880_v53 = vld [vmem:[#allocation6 + $0x8] sm:$0xff]   ;;  %v883_v56 = vld [vmem:[#allocation6 + $0x58] sm:$0xff]  }
  0x49   :  { %197 = vmatprep.subr.bf16.mxu0 %v819_v15  ;;  %448 = vmatprep.subr.bf16.mxu1 %v841_v24  ;;  %v884_v57 = vld [vmem:[#allocation6 + $0x18] sm:$0xff]   ;;  %v885_v58 = vld [vmem:[#allocation6 + $0x60] sm:$0xff]   ;;  %v887_v60 = vld [vmem:[#allocation6 + $0x68] sm:$0xff]  }
  0x4a   :  { %v886_v59 = vld [vmem:[#allocation6 + $0x20] sm:$0xff]   ;;  %v888_v18 = vld [vmem:[#allocation6 + $0x28] sm:$0xff]   ;;  %v890_v20 = vld [vmem:[#allocation6 + $0x30] sm:$0xff]  }
  0x4b   :  { %v89_v0 = vld [vmem:[%s1079_s2] sm:$0x3]  ;;  %v892_v22 = vld [vmem:[#allocation6 + $0x38] sm:$0xff]  }
  0x4c   :  { %198 = vmatpush1.bf16.msra.mxu0 %v821_v17  ;;  %449 = vmatpush1.bf16.msra.mxu1 %v843_v26  ;;  %v94_v2 = vrot.slane %v89_v0, %v93_v63  ;;  %v98_v3 = vrot.slane %v89_v0, %v97_v1 }
  0x4d   :  { %199 = vmatprep.subr.bf16.mxu0 %v822_v19  ;;  %450 = vmatprep.subr.bf16.mxu1 %v844_v28  ;;  %v889_v19 = vld [vmem:[#allocation6 + $0x70] sm:$0xff]  }
  0x50   :  { %200 = vmatpush1.bf16.msra.mxu0 %v824_v21  ;;  %451 = vmatpush1.bf16.msra.mxu1 %v846_v29  ;;  %v891_v21 = vld [vmem:[#allocation6 + $0x78] sm:$0xff]  }
  0x51   :  { %201 = vmatprep.subr.bf16.mxu0 %v825_v23  ;;  %452 = vmatprep.subr.bf16.mxu1 %v847_v30  ;;  %v268_v23 = vld [vmem:[%s1081_s4] sm:$0x3] }
  0x52   :  { %v273_v24 = vrot.slane %v268_v23, %v93_v63 }
  0x54   :  { %202 = vmatpush1.bf16.msra.mxu0 %v827_v25  ;;  %453 = vmatpush1.bf16.msra.mxu1 %v849_v31  ;;  %v277_v25 = vrot.slane %v268_v23, %v97_v1 }
  0x55   :  { %454 = vmatprep.subr.bf16.mxu1 %v850_v32  ;;  %774 = vmatprep.subr.bf16.mxu0 %v877_v50 }
  0x57   :  { %220 = vmatmul.mubr.bf16.vlgmr.msra.gmra.mrb[0].mxu0 %v828_v27 }
  0x58   :  { %455 = vmatpush1.bf16.msra.mxu1 %v852_v33  ;;  %775 = vmatpush3.bf16.msra.mxu0 %v878_v51 }
  0x59   :  { %456 = vmatprep.subr.bf16.mxu1 %v853_v34  ;;  %776 = vmatprep.subr.bf16.mxu0 %v879_v52  ;;  %v764_v52 = vld [vmem:[%s1084_s7] ss:$0 sm:$0xff] }
  0x5c   :  { %457 = vmatpush1.bf16.msra.mxu1 %v855_v35  ;;  %777 = vmatpush3.bf16.msra.mxu0 %v880_v53 }
  0x5d   :  { %458 = vmatprep.subr.bf16.mxu1 %v856_v36  ;;  %778 = vmatprep.subr.bf16.mxu0 %v881_v54 }
  0x60   :  { %459 = vmatpush1.bf16.msra.mxu1 %v858_v37  ;;  %779 = vmatpush3.bf16.msra.mxu0 %v882_v55 }
  0x61   :  { %460 = vmatprep.subr.bf16.mxu1 %v859_v38  ;;  %780 = vmatprep.subr.bf16.mxu0 %v883_v56 }
  0x64   :  { %461 = vmatpush1.bf16.msra.mxu1 %v861_v39  ;;  %781 = vmatpush3.bf16.msra.mxu0 %v884_v57 }
  0x65   :  { %462 = vmatprep.subr.bf16.mxu1 %v862_v40  ;;  %782 = vmatprep.subr.bf16.mxu0 %v885_v58 }
  0x68   :  { %463 = vmatpush1.bf16.msra.mxu1 %v864_v41  ;;  %783 = vmatpush3.bf16.msra.mxu0 %v886_v59  ;;  %v747_v41 = vld [vmem:[%s1083_s6] ss:$0 sm:$0xff] }
  0x69   :  { %464 = vmatprep.subr.bf16.mxu1 %v865_v42  ;;  %784 = vmatprep.subr.bf16.mxu0 %v887_v60 }
  0x6c   :  { %465 = vmatpush1.bf16.msra.mxu1 %v867_v43  ;;  %785 = vmatpush3.bf16.msra.mxu0 %v888_v18 }
  0x6d   :  { %466 = vmatprep.subr.bf16.mxu1 %v868_v44  ;;  %786 = vmatprep.subr.bf16.mxu0 %v889_v19 }
  0x70   :  { %467 = vmatpush1.bf16.msra.mxu1 %v870_v45  ;;  %787 = vmatpush3.bf16.msra.mxu0 %v890_v20 }
  0x71   :  { %468 = vmatprep.subr.bf16.mxu1 %v871_v46  ;;  %788 = vmatprep.subr.bf16.mxu0 %v891_v21 }
  0x74   :  { %469 = vmatpush1.bf16.msra.mxu1 %v873_v47  ;;  %789 = vmatpush3.bf16.msra.mxu0 %v892_v22 }
  0x75   :  { %470 = vmatprep.subr.bf16.mxu1 %v874_v48 }
  0x78   :  { %471 = vmatpush1.bf16.msra.mxu1 %v876_v49 }
 0x12a   :  { %v221_v4 = vpop.f32.mrb[0].mxu0 }
 0x12b   :  { %v222_v5 = vadd.f32 %v221_v4, %v94_v2  ;;  %v223_v6 = vpop.f32.mrb[1].mxu0 }
 0x12c   :  { %v224_v7 = vadd.f32 %v223_v6, %v98_v3  ;;  %v225_v8 = vpop.f32.mrb[2].mxu0 }
 0x12d   :  { %v226_v9 = vadd.f32 %v225_v8, %v94_v2  ;;  %v227_v10 = vpop.f32.mrb[3].mxu0  ;;  %v230_v12 = vmax.f32 %v222_v5, 0.0 }
 0x12e   :  { %v228_v11 = vadd.f32 %v227_v10, %v98_v3  ;;  %v231_v14 = vmax.f32 %v224_v7, 0.0 }
 0x12f   :  { %v232_v13 = vmax.f32 %v226_v9, 0.0 }
 0x130   :  { %v233_v15 = vmax.f32 %v228_v11, 0.0 }
 0x131   :  { %v234_v16 = vpack.c.bf16 %v232_v13, %v230_v12 }
 0x132   :  { %v235_v17 = vpack.c.bf16 %v233_v15, %v231_v14 }
 0x134   :  { %472 = vmatprep.mubr.bf16.mxu1 %v235_v17 }
 0x135   :  { %473 = vmatmul.mubr.bf16.vlgmr.msra.gmra.mrb[0].mxu1 %v234_v16 }
 0x208   :  { %v474_v26 = vpop.f32.mrb[0].mxu1 }
 0x209   :  { %v475_v27 = vadd.f32 %v474_v26, %v273_v24  ;;  %v476_v28 = vpop.f32.mrb[1].mxu1 }
 0x20a   :  { %v477_v29 = vadd.f32 %v476_v28, %v277_v25  ;;  %v478_v30 = vpop.f32.mrb[2].mxu1 }
 0x20b   :  { %v479_v31 = vadd.f32 %v478_v30, %v273_v24  ;;  %v480_v32 = vpop.f32.mrb[3].mxu1  ;;  %v483_v34 = vmax.f32 %v475_v27, 0.0 }
 0x20c   :  { %v481_v33 = vadd.f32 %v480_v32, %v277_v25  ;;  %v484_v36 = vmax.f32 %v477_v29, 0.0 }
 0x20d   :  { %v485_v35 = vmax.f32 %v479_v31, 0.0 }
 0x20e   :  { %v486_v37 = vmax.f32 %v481_v33, 0.0 }
 0x20f   :  { %v487_v38 = vpack.c.bf16 %v485_v35, %v483_v34 }
 0x210   :  { %v488_v39 = vpack.c.bf16 %v486_v37, %v484_v36 }
 0x212   :  { %656 = vmatprep.mubr.bf16.mxu0 %v488_v39 }
 0x213   :  { %657 = vmatmul.mubr.bf16.vlgmr.msra.gmra.mrb[4].mxu0 %v487_v38 }
 0x2e6   :  { %v790_v40 = vpop.f32.mrb[4].mxu0 }
 0x2e7   :  { %v791_v42 = vpop.f32.mrb[5].mxu0 }
 0x2e8   :  { %v792_v43 = vadd.f32 %v791_v42, %v790_v40  ;;  %v793_v44 = vpop.f32.mrb[6].mxu0 }
 0x2e9   :  { %v794_v45 = vpop.f32.mrb[7].mxu0 }
 0x2ea   :  { %v659_v46 = vadd.f32 %v792_v43, %v747_v41  ;;  %v795_v47 = vadd.f32 %v794_v45, %v793_v44 }
 0x2ec   :  { %v665_v48 = vmax.f32 %v659_v46, 1e-06  ;;  %v662_v49 = vadd.f32 %v795_v47, %v747_v41 }
 0x2ee   :  { %v667_v50 = vmin.f32 %v665_v48, 1.0  ;;  %v666_v51 = vmax.f32 %v662_v49, 1e-06 }
 0x2f0   :  { %v670_v53 = vsub.f32 %v667_v50, %v659_v46  ;;  %v668_v54 = vmin.f32 %v666_v51, 1.0 }
 0x2f2   :  { %v678_v55 = vmul.f32 %v764_v52, %v670_v53  ;;  %v671_v56 = vsub.f32 %v668_v54, %v662_v49 }
 0x2f4   :  { %v679_v57 = vmul.f32 %v764_v52, %v671_v56  ;;  %v680_v58 = vadd.f32 %v678_v55, %v659_v46 }
 0x2f6   :  { %v681_v59 = vadd.f32 %v679_v57, %v662_v49 }
 0x2f8   :  { %v772_v60 = vpack.c.bf16 %v681_v59, %v680_v58 }
 0x2fa   :  { %773 = vst [vmem:[%s1085_s8] sm:$0xff] %v772_v60  }
 0x2fb   :  { %696 = vsyncpa [#allocation3], 1 }
 0x2fc   :  { %697 = vsyncpa [#allocation5], 1 }

</bundles_post_ra>
